<compile_context>
chip_gen: v7x
topology: tpu7x:2x2x1
jax: 0.10.0
libtpu: 0.0.40
codegen_flags: <defaults>
</compile_context>

<pallas_src>
import jax
import jax.numpy as jnp
from jax.experimental import pallas as pl
from jax.experimental.pallas import tpu as pltpu

LANE = 128                       # TPU vreg lane width
_MAX_TILE_ROWS = 8 * 1024
_TARGET_BLOCK_BYTES = 1 << 20    # ~1 MiB x-blocks per grid step


def _round_up(n, m):
    return ((n + m - 1) // m) * m


def _choose_tile_b(batch, feat):
    """Rows per grid step: multiple of 128, ~1 MiB of x per block, never more than needed."""
    rows = _TARGET_BLOCK_BYTES // max(1, feat * 4)
    rows = max(LANE, min(_MAX_TILE_ROWS, rows))
    rows = (rows // LANE) * LANE
    return min(rows, _round_up(batch, LANE))


def _sigmoid(z):
    # exp lands on the EUP; exact reciprocal keeps results within 1e-5 of jax.nn.sigmoid.
    # (pl.reciprocal(..., approx=True) is a free EUP win if ~1e-4 rel error is acceptable.)
    return pl.reciprocal(1.0 + jnp.exp(-z), approx=False)


# ---------------- kernels ----------------

def _forward_kernel(x_ref, w_ref, b_ref, o_ref):
    # x_ref: (TILE_B, D) VMEM; w_ref: (1, D) VMEM; b_ref: (1, 1) SMEM scalar
    # o_ref: (1, TILE_B//128, 128) VMEM -- lane-dense output (unmasked stores)
    # VPU multiply + lane reduce instead of a 1-output-column MXU matmul.
    z = jnp.sum(x_ref[...] * w_ref[...], axis=-1) + b_ref[0, 0]      # (TILE_B,)
    p = _sigmoid(z)
    o_ref[...] = p.reshape(o_ref.shape).astype(o_ref.dtype)


def _make_loss_kernel(tile_b, total_b, masked):
    sub = tile_b // LANE

    def kernel(x_ref, w_ref, b_ref, y_ref, loss_ref, acc_ref):
        i = pl.program_id(0)

        @pl.when(i == 0)
        def _init():
            acc_ref[...] = jnp.zeros_like(acc_ref)

        z = jnp.sum(x_ref[...] * w_ref[...], axis=-1) + b_ref[0, 0]   # (tile_b,)
        p = _sigmoid(z).reshape(1, sub, LANE)
        diff = p - y_ref[...]
        if masked:  # zero out padded rows so they don't pollute the global mean
            row = (i * tile_b
                   + jax.lax.broadcasted_iota(jnp.int32, (1, sub, LANE), 1) * LANE
                   + jax.lax.broadcasted_iota(jnp.int32, (1, sub, LANE), 2))
            diff = jnp.where(row < total_b, diff, 0.0)
        sq = diff * diff
        acc_ref[...] += jnp.sum(jnp.sum(sq, axis=2), axis=1, keepdims=True)   # (1, 1)

        @pl.when(i == pl.num_programs(0) - 1)
        def _finalize():
            loss_ref[...] = (acc_ref[...] * (1.0 / total_b)).astype(loss_ref.dtype)

    return kernel


# ---------------- wrapper ----------------

def my_model_forward(x, weight, bias, y_true=None):
    """Pallas equivalent of MyModel.forward.

    x:      (B, D) float32
    weight: (1, D) float32   (nn.Linear(input_size, 1).weight layout)
    bias:   (1,)   float32   (nn.Linear(input_size, 1).bias)
    y_true: optional (B, 1) float32 -> returns scalar MSE loss (mean reduction)
    """
    x = jnp.asarray(x, jnp.float32)
    B, D = x.shape
    w_row = jnp.asarray(weight, jnp.float32).reshape(1, D)
    b11 = jnp.asarray(bias, jnp.float32).reshape(1, 1)

    tile_b = _choose_tile_b(B, D)
    n_tiles = _round_up(B, tile_b) // tile_b
    Bp = n_tiles * tile_b
    sub = tile_b // LANE

    x_p = x if Bp == B else jnp.pad(x, ((0, Bp - B), (0, 0)))

    x_spec = pl.BlockSpec((tile_b, D), lambda i: (i, 0))
    w_spec = pl.BlockSpec((1, D), lambda i: (0, 0))                 # tiny, stays resident
    b_spec = pl.BlockSpec(memory_space=pltpu.MemorySpace.SMEM)      # scalar bias in SMEM

    if y_true is None:
        out = pl.pallas_call(
            _forward_kernel,
            out_shape=jax.ShapeDtypeStruct((n_tiles, sub, LANE), jnp.float32),
            grid=(n_tiles,),
            in_specs=[x_spec, w_spec, b_spec],
            out_specs=pl.BlockSpec((1, sub, LANE), lambda i: (i, 0, 0)),
            compiler_params=pltpu.CompilerParams(
                dimension_semantics=("parallel",)),   # batch is embarrassingly parallel
        )(x_p, w_row, b11)
        return out.reshape(Bp, 1)[:B]

    y = jnp.asarray(y_true, jnp.float32).reshape(B, 1)
    y_p = y if Bp == B else jnp.pad(y, ((0, Bp - B), (0, 0)))
    y_lanes = y_p.reshape(n_tiles, sub, LANE)          # lane-dense view, free reshape

    loss = pl.pallas_call(
        _make_loss_kernel(tile_b, B, masked=(Bp != B)),
        out_shape=jax.ShapeDtypeStruct((1, 1), jnp.float32),
        grid=(n_tiles,),
        in_specs=[x_spec, w_spec, b_spec,
                  pl.BlockSpec((1, sub, LANE), lambda i: (i, 0, 0))],
        out_specs=pl.BlockSpec((1, 1), lambda i: (0, 0)),
        scratch_shapes=[pltpu.VMEM((1, 1), jnp.float32)],
        compiler_params=pltpu.CompilerParams(
            dimension_semantics=("arbitrary",)),       # reduction axis (accumulator)
    )(x_p, w_row, b11, y_lanes)
    return loss[0, 0]


# ---------------- demo ----------------

if __name__ == "__main__":
    key = jax.random.PRNGKey(0)
    k_x, k_w, k_b, k_y = jax.random.split(key, 4)

    B, D = 8, 32   # batch=8, input_size=32  (nn.Linear(32, 1))

    x = jax.random.normal(k_x, (B, D), dtype=jnp.float32)
    bound = 1.0 / jnp.sqrt(jnp.float32(D))          # nn.Linear default init range
    weight = jax.random.uniform(k_w, (1, D), jnp.float32, -bound, bound)
    bias = jax.random.uniform(k_b, (1,), jnp.float32, -bound, bound)
    y_true = jax.random.uniform(k_y, (B, 1), dtype=jnp.float32)

    # Inference path: sigmoid(linear(x))
    preds = jax.block_until_ready(my_model_forward(x, weight, bias))
    # Training path: fused MSE loss
    loss = jax.block_until_ready(my_model_forward(x, weight, bias, y_true=y_true))

    # Plain-JAX reference
    ref_pred = jax.nn.sigmoid(x @ weight.T + bias)
    ref_loss = jnp.mean((ref_pred - y_true) ** 2)

    assert preds.shape == (B, 1)
    assert jnp.allclose(preds, ref_pred, atol=1e-5), "prediction mismatch"
    assert jnp.allclose(loss, ref_loss, atol=1e-5), "loss mismatch"

    print("KERNEL_OK")
</pallas_src>

<mosaic_0001>
module attributes {stable_mosaic.version = 11 : i64} {
  func.func @_forward_kernel(%arg0: i32, %arg1: memref<128x32xf32, #tpu.memory_space<vmem>>, %arg2: memref<1x32xf32, #tpu.memory_space<vmem>>, %arg3: memref<1x1xf32, #tpu.memory_space<smem>>, %arg4: memref<1x1x128xf32, #tpu.memory_space<vmem>>) attributes {dimension_semantics = [#tpu.dimension_semantics<parallel>], iteration_bounds = array<i64: 1>, scalar_prefetch = 0 : i64, scratch_operands = 0 : i64, tpu.core_type = #tpu.core_type<tc>, window_params = [{transform_indices = @transform_0, window_bounds = array<i64: 128, 32>}, {pipeline_mode = #tpu.pipeline_mode<synchronous>, transform_indices = @transform_1, window_bounds = array<i64: 1, 32>}, {transform_indices = @transform_2, window_bounds = array<i64: 1, 1>}, {transform_indices = @transform_3, window_bounds = array<i64: 1, 1, 128>}]} {
    %c0 = arith.constant 0 : index
    %c0_0 = arith.constant 0 : index
    %0 = vector.load %arg1[%c0, %c0_0] : memref<128x32xf32, #tpu.memory_space<vmem>>, vector<128x32xf32>
    %c0_1 = arith.constant 0 : index
    %c0_2 = arith.constant 0 : index
    %1 = vector.load %arg2[%c0_1, %c0_2] : memref<1x32xf32, #tpu.memory_space<vmem>>, vector<1x32xf32>
    %2 = vector.broadcast %1 : vector<1x32xf32> to vector<128x32xf32>
    %3 = arith.mulf %0, %2 : vector<128x32xf32>
    %cst = arith.constant dense<0.000000e+00> : vector<128xf32>
    %4 = vector.multi_reduction <add>, %3, %cst [1] : vector<128x32xf32> to vector<128xf32>
    %c0_3 = arith.constant 0 : index
    %c0_4 = arith.constant 0 : index
    %5 = memref.load %arg3[%c0_3, %c0_4] : memref<1x1xf32, #tpu.memory_space<smem>>
    %6 = vector.broadcast %5 : f32 to vector<128xf32>
    %7 = arith.addf %4, %6 : vector<128xf32>
    %cst_5 = arith.constant 0.000000e+00 : f32
    %8 = vector.broadcast %cst_5 : f32 to vector<128xf32>
    %9 = arith.subf %8, %7 : vector<128xf32>
    %10 = math.exp %9 : vector<128xf32>
    %cst_6 = arith.constant 1.000000e+00 : f32
    %11 = vector.broadcast %cst_6 : f32 to vector<128xf32>
    %12 = arith.addf %11, %10 : vector<128xf32>
    %13 = tpu.reciprocal %12 : vector<128xf32> -> vector<128xf32>
    %14 = vector.shape_cast %13 : vector<128xf32> to vector<1x1x128xf32>
    %c0_7 = arith.constant 0 : index
    %c0_8 = arith.constant 0 : index
    %c0_9 = arith.constant 0 : index
    %15 = vector.load %arg4[%c0_7, %c0_8, %c0_9] : memref<1x1x128xf32, #tpu.memory_space<vmem>>, vector<1x1x128xf32>
    tpu.vector_store %arg4[%c0_7, %c0_8, %c0_9], %14 {strides = array<i32>} : memref<1x1x128xf32, #tpu.memory_space<vmem>>, vector<1x1x128xf32>,
    return
  }
  func.func @transform_0(%arg0: i32) -> (i32, i32) {
    %c0_i32 = arith.constant 0 : i32
    %c0_i32_0 = arith.constant 0 : i32
    return %arg0, %c0_i32 : i32, i32
  }
  func.func @transform_1(%arg0: i32) -> (i32, i32) {
    %c0_i32 = arith.constant 0 : i32
    %c0_i32_0 = arith.constant 0 : i32
    %c0_i32_1 = arith.constant 0 : i32
    return %c0_i32, %c0_i32_0 : i32, i32
  }
  func.func @transform_2(%arg0: i32) -> (i32, i32) {
    %c0_i32 = arith.constant 0 : i32
    %c0_i32_0 = arith.constant 0 : i32
    %c0_i32_1 = arith.constant 0 : i32
    return %c0_i32, %c0_i32_0 : i32, i32
  }
  func.func @transform_3(%arg0: i32) -> (i32, i32, i32) {
    %c0_i32 = arith.constant 0 : i32
    %c0_i32_0 = arith.constant 0 : i32
    %c0_i32_1 = arith.constant 0 : i32
    return %arg0, %c0_i32, %c0_i32_0 : i32, i32, i32
  }
}

</mosaic_0001>

<bundles_post_ra>
// kernel: tpu_custom_call.1
= control target key start
LH: loop header
LB: loop body
LE: loop exit
PB: predicated region body
PF: predicated region fallthrough
CT: control target
= control target key end

     0   :  { %vm55_vm0 = vcmask 261120   ;;  %s597_s0 = inlined_call_operand.vmem [shape: f32[128,32], index: 0, kind: input, shape index: {}]   ;;  %s598_s1 = inlined_call_operand.vmem [shape: f32[1,32], index: 1, kind: input, shape index: {}]   ;;  %s599_s2 = inlined_call_operand.<no memory space> [shape: f32[1,1], index: 2, kind: input, shape index: {}]   ;;  %s600_s3 = inlined_call_operand.hbm [shape: f32[1,1,128], index: 3, kind: output, shape index: {}]  }
   0x1   :  { %v16_v0 = vld [vmem:[%s597_s0] sm:$0xff]  ;;  %v18_v2 = vld [vmem:[%s597_s0 + $0x10] sm:$0xff]  ;;  %v17_v5 = vld [vmem:[%s597_s0 + $0x8] sm:$0xff] }
   0x2   :  { %v345_v1 = vld [vmem:[%s598_s1] ss:$0 sm:$0xff]  ;;  %v19_v6 = vld [vmem:[%s597_s0 + $0x18] sm:$0xff]  ;;  %v21_v10 = vld [vmem:[%s597_s0 + $0x28] sm:$0xff] }
   0x3   :  { %v39_v3 = vmul.f32 %v345_v1, %v16_v0  ;;  %v41_v4 = vmul.f32 %v345_v1, %v18_v2  ;;  %v40_v7 = vmul.f32 %v345_v1, %v17_v5  ;;  %v42_v8 = vmul.f32 %v345_v1, %v19_v6  ;;  %v20_v9 = vld [vmem:[%s597_s0 + $0x20] sm:$0xff] }
   0x4   :  { %v43_v15 = vmul.f32 %v345_v1, %v20_v9  ;;  %v44_v16 = vmul.f32 %v345_v1, %v21_v10 }
   0x5   :  { %v56_v11 = vsel %vm55_vm0, %v39_v3, 0.0  ;;  %v62_v12 = vsel %vm55_vm0, %v41_v4, 0.0  ;;  %v59_v13 = vsel %vm55_vm0, %v40_v7, 0.0  ;;  %v65_v14 = vsel %vm55_vm0, %v42_v8, 0.0 }
   0x6   :  { %57 = vadd.xlane.f32.xlu0 %v56_v11  ;;  %63 = vadd.xlane.f32.xlu1 %v62_v12 }
   0x7   :  { %9 = vsyncpa [#allocation4], 0  ;;  %v22_v17 = vld [vmem:[%s597_s0 + $0x30] sm:$0xff]  ;;  %v23_v18 = vld [vmem:[%s597_s0 + $0x38] sm:$0xff]  ;;  %v68_v19 = vsel %vm55_vm0, %v43_v15, 0.0  ;;  %v71_v20 = vsel %vm55_vm0, %v44_v16, 0.0  ;;  %v526_v49 = vstv %s599_s2  ;;  %v218_v16 = vlaneseq }
   0x8   :  { %v45_v21 = vmul.f32 %v345_v1, %v22_v17  ;;  %v46_v22 = vmul.f32 %v345_v1, %v23_v18  ;;  %v24_v23 = vld [vmem:[%s597_s0 + $0x40] sm:$0xff]  ;;  %v25_v24 = vld [vmem:[%s597_s0 + $0x48] sm:$0xff]  ;;  %v26_v29 = vld [vmem:[%s597_s0 + $0x50] sm:$0xff]  ;;  %vm229_vm1 = vcmask 130112   ;;  %vm236_vm2 = vcmask 195712  }
   0x9   :  { %v47_v27 = vmul.f32 %v345_v1, %v24_v23  ;;  %v48_v28 = vmul.f32 %v345_v1, %v25_v24  ;;  %v27_v30 = vld [vmem:[%s597_s0 + $0x58] sm:$0xff]  ;;  %v49_v33 = vmul.f32 %v345_v1, %v26_v29  ;;  %v28_v35 = vld [vmem:[%s597_s0 + $0x60] sm:$0xff]  ;;  %v29_v36 = vld [vmem:[%s597_s0 + $0x68] sm:$0xff]  ;;  %v538_v29 = vand.u32 127, %v218_v16 }
   0xa   :  { %60 = vadd.xlane.f32.xlu0 %v59_v13  ;;  %66 = vadd.xlane.f32.xlu1 %v65_v14  ;;  %v74_v25 = vsel %vm55_vm0, %v45_v21, 0.0  ;;  %v77_v26 = vsel %vm55_vm0, %v46_v22, 0.0  ;;  %v50_v34 = vmul.f32 %v345_v1, %v27_v30  ;;  %v51_v39 = vmul.f32 %v345_v1, %v28_v35  ;;  %v30_v41 = vld [vmem:[%s597_s0 + $0x70] sm:$0xff]  ;;  %v31_v42 = vld [vmem:[%s597_s0 + $0x78] sm:$0xff]  ;;  %s435_s0 = smov [#allocation3]  }
   0xb   :  { %v80_v31 = vsel %vm55_vm0, %v47_v27, 0.0  ;;  %v83_v32 = vsel %vm55_vm0, %v48_v28, 0.0  ;;  %v86_v37 = vsel %vm55_vm0, %v49_v33, 0.0  ;;  %v52_v40 = vmul.f32 %v345_v1, %v29_v36  ;;  %s337_s2 = sshll.u32 %s435_s0, 4  ;;  %s338_s2 = int_to_ptr.vmem [resolvable:$true] %s337_s2 }
   0xc   :  { %v89_v38 = vsel %vm55_vm0, %v50_v34, 0.0  ;;  %v92_v43 = vsel %vm55_vm0, %v51_v39, 0.0  ;;  %v53_v45 = vmul.f32 %v345_v1, %v30_v41  ;;  %v54_v46 = vmul.f32 %v345_v1, %v31_v42  ;;  %s411_s20 = scalar_lea.vmem %s338_s2, 16  ;;  %s415_s21 = scalar_lea.vmem %s338_s2, 32 }
   0xd   :  { %v95_v44 = vsel %vm55_vm0, %v52_v40, 0.0  ;;  %v542_v41 = vshrl.u32 %v218_v16, 7  ;;  %v231_v42 = vadd.s32 4294967280, %v538_v29  ;;  %vm243_vm3 = vcmask 261312   ;;  %p412_p0 = scmp.ne.s32.totalorder %s338_s2, %s411_s20  ;;  %p416_p1 = scmp.lt.s32.totalorder %s338_s2, %s338_s2 }
   0xe   :  { %69 = vadd.xlane.f32.xlu0 %v68_v19  ;;  %72 = vadd.xlane.f32.xlu1 %v71_v20  ;;  %v98_v47 = vsel %vm55_vm0, %v53_v45, 0.0  ;;  %v101_v48 = vsel %vm55_vm0, %v54_v46, 0.0  ;;  %vm250_vm4 = vcmask 326912   ;;  %vm257_vm5 = vcmask 392512   ;;  %p417_p2 = scmp.lt.s32.totalorder %s415_s21, %s411_s20 }
   0xf   :  { %vm264_vm6 = vcmask 458112   ;;  %vm271_vm7 = vcmask 523712   ;;  %vm278_vm8 = vcmask 589312   ;;  %vm285_vm9 = vcmask 654912  }
  0x10   :  { %vm292_vm10 = vcmask 720512   ;;  %vm299_vm11 = vcmask 786112   ;;  %vm306_vm12 = vcmask 851712   ;;  %vm313_vm13 = vcmask 917312   ;;  %p418_p3 = por %p417_p2, %p416_p1 }
  0x11   :  { %vm320_vm14 = vcmask 982912   ;;  %vm327_vm15 = vcmask 1048512  }
  0x12   :  { %75 = vadd.xlane.f32.xlu0 %v74_v25  ;;  %78 = vadd.xlane.f32.xlu1 %v77_v26  ;;  %p419_p4 = pnand %p418_p3, %p412_p0 }
  0x16   :  { %81 = vadd.xlane.f32.xlu0 %v80_v31  ;;  %84 = vadd.xlane.f32.xlu1 %v83_v32 }
  0x1a   :  { %87 = vadd.xlane.f32.xlu0 %v86_v37  ;;  %90 = vadd.xlane.f32.xlu1 %v89_v38 }
  0x1e   :  { %93 = vadd.xlane.f32.xlu0 %v92_v43  ;;  %96 = vadd.xlane.f32.xlu1 %v95_v44 }
  0x22   :  { %99 = vadd.xlane.f32.xlu0 %v98_v47  ;;  %102 = vadd.xlane.f32.xlu1 %v101_v48 }
  0x93   :  { %v58_v50 = vpop.xlane.xlu0 %57  ;;  %v64_v51 = vpop.xlane.xlu1 %63 }
  0x94   :  { %v106_v52 = vadd.f32 %v526_v49, %v58_v50  ;;  %v108_v53 = vadd.f32 %v526_v49, %v64_v51 }
  0x96   :  { %v122_v54 = vsub.f32 0.0, %v106_v52  ;;  %v124_v55 = vsub.f32 0.0, %v108_v53  ;;  %v224_v52 = vadd.s32 4294967288, %v538_v29 }
  0x97   :  { %v61_v56 = vpop.xlane.xlu0 %60  ;;  %v67_v57 = vpop.xlane.xlu1 %66 }
  0x98   :  { %v138_v58 = vmul.f32 1.442695, %v122_v54  ;;  %v142_v59 = vmul.f32 1.442695, %v124_v55  ;;  %v107_v60 = vadd.f32 %v526_v49, %v61_v56  ;;  %v109_v61 = vadd.f32 %v526_v49, %v67_v57 }
  0x9a   :  { %347 = vpow2.f32 %v138_v58  ;;  %v123_v62 = vsub.f32 0.0, %v107_v60  ;;  %v125_v63 = vsub.f32 0.0, %v109_v61  ;;  %v222_v58 = vsub.s32 %v538_v29, %v542_v41 }
  0x9b   :  { %349 = vpow2.f32 %v142_v59  ;;  %v70_v0 = vpop.xlane.xlu0 %69  ;;  %v73_v1 = vpop.xlane.xlu1 %72  ;;  %v234_v59 = vsub.s32 %v231_v42, %v542_v41  ;;  %v238_v60 = vadd.s32 4294967272, %v538_v29 }
  0x9c   :  { %v140_v2 = vmul.f32 1.442695, %v123_v62  ;;  %v144_v3 = vmul.f32 1.442695, %v125_v63  ;;  %v110_v4 = vadd.f32 %v526_v49, %v70_v0  ;;  %v111_v5 = vadd.f32 %v526_v49, %v73_v1 }
  0x9e   :  { %351 = vpow2.f32 %v140_v2  ;;  %v126_v6 = vsub.f32 0.0, %v110_v4  ;;  %v127_v7 = vsub.f32 0.0, %v111_v5  ;;  %v245_v4 = vadd.s32 4294967264, %v538_v29 }
  0x9f   :  { %353 = vpow2.f32 %v144_v3  ;;  %v76_v8 = vpop.xlane.xlu0 %75  ;;  %v79_v9 = vpop.xlane.xlu1 %78 }
  0xa0   :  { %v146_v10 = vmul.f32 1.442695, %v126_v6  ;;  %v148_v11 = vmul.f32 1.442695, %v127_v7  ;;  %v112_v12 = vadd.f32 %v526_v49, %v76_v8  ;;  %v113_v13 = vadd.f32 %v526_v49, %v79_v9 }
  0xa1   :  { %v227_v8 = vsub.s32 %v224_v52, %v542_v41 }
  0xa2   :  { %355 = vpow2.f32 %v146_v10  ;;  %v128_v14 = vsub.f32 0.0, %v112_v12  ;;  %v129_v15 = vsub.f32 0.0, %v113_v13  ;;  %v252_v12 = vadd.s32 4294967256, %v538_v29 }
  0xa3   :  { %357 = vpow2.f32 %v148_v11  ;;  %v82_v17 = vpop.xlane.xlu0 %81  ;;  %v85_v18 = vpop.xlane.xlu1 %84  ;;  %v241_v11 = vsub.s32 %v238_v60, %v542_v41 }
  0xa4   :  { %v348_v19 = vpop.eup %347  ;;  %v150_v20 = vmul.f32 1.442695, %v128_v14  ;;  %v114_v21 = vadd.f32 %v526_v49, %v82_v17  ;;  %v115_v22 = vadd.f32 %v526_v49, %v85_v18  ;;  %v152_v25 = vmul.f32 1.442695, %v129_v15 }
  0xa5   :  { %v350_v23 = vpop.eup %349  ;;  %v170_v24 = vadd.f32 1.0, %v348_v19 }
  0xa6   :  { %v172_v26 = vadd.f32 1.0, %v350_v23  ;;  %359 = vpow2.f32 %v150_v20  ;;  %v130_v27 = vsub.f32 0.0, %v114_v21  ;;  %v131_v28 = vsub.f32 0.0, %v115_v22 }
  0xa7   :  { %361 = vrcp.f32 %v170_v24  ;;  %v88_v30 = vpop.xlane.xlu0 %87  ;;  %v91_v31 = vpop.xlane.xlu1 %90  ;;  %v259_v23 = vadd.s32 4294967248, %v538_v29 }
  0xa8   :  { %v352_v32 = vpop.eup %351  ;;  %363 = vrcp.f32 %v172_v26  ;;  %v154_v33 = vmul.f32 1.442695, %v130_v27  ;;  %v116_v34 = vadd.f32 %v526_v49, %v88_v30  ;;  %v156_v37 = vmul.f32 1.442695, %v131_v28 }
  0xa9   :  { %v354_v35 = vpop.eup %353  ;;  %v171_v36 = vadd.f32 1.0, %v352_v32  ;;  %365 = vpow2.f32 %v152_v25  ;;  %v117_v38 = vadd.f32 %v526_v49, %v91_v31  ;;  %v255_v27 = vsub.s32 %v252_v12, %v542_v41 }
  0xaa   :  { %v173_v39 = vadd.f32 1.0, %v354_v35  ;;  %367 = vpow2.f32 %v154_v33  ;;  %v132_v40 = vsub.f32 0.0, %v116_v34  ;;  %v266_v31 = vadd.s32 4294967240, %v538_v29 }
  0xab   :  { %369 = vrcp.f32 %v171_v36  ;;  %v133_v43 = vsub.f32 0.0, %v117_v38  ;;  %v94_v44 = vpop.xlane.xlu0 %93  ;;  %v97_v45 = vpop.xlane.xlu1 %96  ;;  %v273_v35 = vadd.s32 4294967232, %v538_v29  ;;  %v308_v12 = vadd.s32 4294967192, %v538_v29 }
  0xac   :  { %v356_v46 = vpop.eup %355  ;;  %371 = vrcp.f32 %v173_v39  ;;  %v158_v47 = vmul.f32 1.442695, %v132_v40  ;;  %v118_v48 = vadd.f32 %v526_v49, %v94_v44  ;;  %v119_v50 = vadd.f32 %v526_v49, %v97_v45 }
  0xad   :  { %v358_v51 = vpop.eup %357  ;;  %v174_v53 = vadd.f32 1.0, %v356_v46  ;;  %373 = vpow2.f32 %v156_v37  ;;  %v160_v54 = vmul.f32 1.442695, %v133_v43  ;;  %v262_v39 = vsub.s32 %v259_v23, %v542_v41 }
  0xae   :  { %v175_v55 = vadd.f32 1.0, %v358_v51  ;;  %375 = vpow2.f32 %v158_v47  ;;  %v134_v56 = vsub.f32 0.0, %v118_v48  ;;  %v135_v57 = vsub.f32 0.0, %v119_v50 }
  0xaf   :  { %377 = vrcp.f32 %v174_v53  ;;  %v100_v61 = vpop.xlane.xlu0 %99  ;;  %v103_v62 = vpop.xlane.xlu1 %102  ;;  %v269_v44 = vsub.s32 %v266_v31, %v542_v41  ;;  %v276_v48 = vsub.s32 %v273_v35, %v542_v41  ;;  %v280_v50 = vadd.s32 4294967224, %v538_v29 }
  0xb0   :  { %v360_v63 = vpop.eup %359  ;;  %379 = vrcp.f32 %v175_v55  ;;  %v162_v0 = vmul.f32 1.442695, %v134_v56  ;;  %v164_v1 = vmul.f32 1.442695, %v135_v57  ;;  %v120_v2 = vadd.f32 %v526_v49, %v100_v61 }
  0xb1   :  { %v362_v3 = vpop.eup %361  ;;  %v176_v5 = vadd.f32 1.0, %v360_v63  ;;  %381 = vpow2.f32 %v160_v54  ;;  %v121_v6 = vadd.f32 %v526_v49, %v103_v62  ;;  %v248_v49 = vsub.s32 %v245_v4, %v542_v41 }
  0xb2   :  { %v364_v7 = vpop.eup %363  ;;  %383 = vpow2.f32 %v162_v0  ;;  %v136_v9 = vsub.f32 0.0, %v120_v2  ;;  %v223_v21 = vrot.slane %v362_v3, %v222_v58  ;;  %v287_v55 = vadd.s32 4294967216, %v538_v29 }
  0xb3   :  { %v366_v10 = vpop.eup %365  ;;  %385 = vrcp.f32 %v176_v5  ;;  %v137_v13 = vsub.f32 0.0, %v121_v6  ;;  %v235_v25 = vrot.slane %v364_v7, %v234_v59  ;;  %v294_v58 = vadd.s32 4294967208, %v538_v29 }
  0xb4   :  { %v368_v14 = vpop.eup %367  ;;  %v177_v15 = vadd.f32 1.0, %v366_v10  ;;  %387 = vpow2.f32 %v164_v1  ;;  %v166_v16 = vmul.f32 1.442695, %v136_v9  ;;  %v283_v62 = vsub.s32 %v280_v50, %v542_v41 }
  0xb5   :  { %v370_v17 = vpop.eup %369  ;;  %v178_v18 = vadd.f32 1.0, %v368_v14  ;;  %v168_v19 = vmul.f32 1.442695, %v137_v13  ;;  %v290_v2 = vsub.s32 %v287_v55, %v542_v41  ;;  %v301_v3 = vadd.s32 4294967200, %v538_v29 }
  0xb6   :  { %v372_v20 = vpop.eup %371  ;;  %v228_v22 = vrot.slane %v370_v17, %v227_v8  ;;  %389 = vrcp.f32 %v177_v15  ;;  %v297_v8 = vsub.s32 %v294_v58, %v542_v41  ;;  %v315_v17 = vadd.s32 4294967184, %v538_v29 }
  0xb7   :  { %v374_v24 = vpop.eup %373  ;;  %v242_v26 = vrot.slane %v372_v20, %v241_v11  ;;  %391 = vrcp.f32 %v178_v18  ;;  %v304_v15 = vsub.s32 %v301_v3, %v542_v41  ;;  %v311_v20 = vsub.s32 %v308_v12, %v542_v41 }
  0xb8   :  { %v376_v28 = vpop.eup %375  ;;  %v230_v30 = vsel %vm229_vm1, %v228_v22, %v223_v21  ;;  %v179_v32 = vadd.f32 1.0, %v374_v24  ;;  %393 = vpow2.f32 %v166_v16  ;;  %v322_v21 = vadd.s32 4294967176, %v538_v29 }
  0xb9   :  { %v378_v33 = vpop.eup %377  ;;  %v237_v34 = vsel %vm236_vm2, %v235_v25, %v230_v30  ;;  %v180_v36 = vadd.f32 1.0, %v376_v28  ;;  %395 = vpow2.f32 %v168_v19  ;;  %v318_v25 = vsub.s32 %v315_v17, %v542_v41 }
  0xba   :  { %v380_v37 = vpop.eup %379  ;;  %v249_v38 = vrot.slane %v378_v33, %v248_v49  ;;  %397 = vrcp.f32 %v179_v32  ;;  %v244_v42 = vsel %vm243_vm3, %v242_v26, %v237_v34  ;;  %v325_v28 = vsub.s32 %v322_v21, %v542_v41 }
  0xbb   :  { %v382_v40 = vpop.eup %381  ;;  %399 = vrcp.f32 %v180_v36  ;;  %v256_v47 = vrot.slane %v380_v37, %v255_v27 }
  0xbc   :  { %v384_v43 = vpop.eup %383  ;;  %v181_v45 = vadd.f32 1.0, %v382_v40  ;;  %v251_v53 = vsel %vm250_vm4, %v249_v38, %v244_v42 }
  0xbd   :  { %v386_v46 = vpop.eup %385  ;;  %v182_v51 = vadd.f32 1.0, %v384_v43  ;;  %v258_v60 = vsel %vm257_vm5, %v256_v47, %v251_v53 }
  0xbe   :  { %v388_v52 = vpop.eup %387  ;;  %v263_v54 = vrot.slane %v386_v46, %v262_v39  ;;  %401 = vrcp.f32 %v181_v45 }
  0xbf   :  { %403 = vrcp.f32 %v182_v51  ;;  %v183_v56 = vadd.f32 1.0, %v388_v52 }
  0xc0   :  { %v390_v57 = vpop.eup %389  ;;  %v265_v0 = vsel %vm264_vm6, %v263_v54, %v258_v60 }
  0xc1   :  { %v392_v59 = vpop.eup %391  ;;  %v270_v61 = vrot.slane %v390_v57, %v269_v44  ;;  %405 = vrcp.f32 %v183_v56 }
  0xc2   :  { %v394_v63 = vpop.eup %393  ;;  %v277_v1 = vrot.slane %v392_v59, %v276_v48 }
  0xc3   :  { %v396_v4 = vpop.eup %395  ;;  %v184_v5 = vadd.f32 1.0, %v394_v63  ;;  %v272_v11 = vsel %vm271_vm7, %v270_v61, %v265_v0 }
  0xc4   :  { %v398_v6 = vpop.eup %397  ;;  %v185_v7 = vadd.f32 1.0, %v396_v4  ;;  %v279_v14 = vsel %vm278_vm8, %v277_v1, %v272_v11 }
  0xc5   :  { %v400_v9 = vpop.eup %399  ;;  %v284_v10 = vrot.slane %v398_v6, %v283_v62  ;;  %407 = vrcp.f32 %v184_v5 }
  0xc6   :  { %v291_v13 = vrot.slane %v400_v9, %v290_v2  ;;  %409 = vrcp.f32 %v185_v7 }
  0xc7   :  { %v286_v18 = vsel %vm285_vm9, %v284_v10, %v279_v14 }
  0xc8   :  { %v402_v16 = vpop.eup %401  ;;  %v293_v22 = vsel %vm292_vm10, %v291_v13, %v286_v18 }
  0xc9   :  { %v404_v49 = vpop.eup %403  ;;  %v298_v19 = vrot.slane %v402_v16, %v297_v8 }
  0xca   :  { %v305_v23 = vrot.slane %v404_v49, %v304_v15 }
  0xcb   :  { %v406_v24 = vpop.eup %405  ;;  %v300_v26 = vsel %vm299_vm11, %v298_v19, %v293_v22 }
  0xcc   :  { %v312_v27 = vrot.slane %v406_v24, %v311_v20  ;;  %v307_v30 = vsel %vm306_vm12, %v305_v23, %v300_v26 }
  0xce   :  { %v314_v29 = vsel %vm313_vm13, %v312_v27, %v307_v30 }
  0xcf   :  { %v408_v31 = vpop.eup %407 }
  0xd0   :  { %v410_v32 = vpop.eup %409  ;;  %v319_v33 = vrot.slane %v408_v31, %v318_v25 }
  0xd1   :  { %v326_v34 = vrot.slane %v410_v32, %v325_v28 }
  0xd2   :  { %v321_v35 = vsel %vm320_vm14, %v319_v33, %v314_v29 }
  0xd3   :  { %v328_v36 = vsel %vm327_vm15, %v326_v34, %v321_v35 }
  0xd4   :  { %330 = vst [vmem:[#allocation3] sm:$0x1] %v328_v36 }
  0xd5   :  { %422 = shalt.err (!%p419_p4)
}
  0xd6   :  { %s423_s1 = scalar_lea.hbm %s600_s3, 16 }
  0xd7   :  { %p424_p5 = scmp.ne.s32.totalorder %s600_s3, %s423_s1  ;;  %p427_p6 = scmp.lt.u32.totalorder %s423_s1, %s600_s3 }
  0xd9   :  { %p429_p7 = pnand %p427_p6, %p424_p5 }
  0xdb   :  { %432 = shalt.err (!%p429_p7)
}
  0xdc   :  { %340 = dma.vmem_to_hbm [thread:$0]  %s338_s2, 16, %s600_s3, [#allocation4]  }
  0xdd   :  { %433 = dma.done.wait [#allocation4], 16  }
  0xde   :  { %434 = vsyncadd [#allocation4], 4294967280 }
  0xdf   :  { %344 = vsyncpa [#allocation4], 1 }

</bundles_post_ra>
